<compile_context>
chip_gen: v7x
topology: tpu7x:2x2x1
jax: 0.10.0
libtpu: 0.0.40
codegen_flags: <defaults>
</compile_context>

<pallas_src>
import functools

import jax
import jax.numpy as jnp
from jax import lax
from jax.experimental import pallas as pl
from jax.experimental.pallas import tpu as pltpu


def _fcomb_kernel(feat_ref, zb_ref,
                  w1_ref,
                  w2_ref, b2_ref,
                  w3_ref, b3_ref,
                  wl_ref, bl_ref,
                  out_ref, *, chunk, n_chunks):
    F = w1_ref.shape[0]
    NC = wl_ref.shape[0]

    # Hoisted out of the chunk loop: weight reads and chunk-wide broadcasts
    # (JAX does not CSE broadcast_in_dim; per-chunk re-broadcast would emit it
    # n_chunks times).
    w1 = w1_ref[...]                                  # (F, F) bf16
    w2 = w2_ref[...]
    w3 = w3_ref[...]
    wl = wl_ref[...]                                  # (NC, F) bf16
    zb = jnp.broadcast_to(zb_ref[0], (F, chunk))      # W1_z @ z + b1 (per batch)
    b2 = jnp.broadcast_to(b2_ref[...], (F, chunk))
    b3 = jnp.broadcast_to(b3_ref[...], (F, chunk))
    bl = jnp.broadcast_to(bl_ref[...], (NC, chunk))

    def compute(start):
        # In-kernel bf16 cast of the feature chunk: VPU work hidden under MXU.
        f = feat_ref[0, :, pl.ds(start, chunk)].astype(jnp.bfloat16)
        # conv1 on concat([feat, z]) == W1_feat @ feat + (W1_z @ z + b1), ReLU.
        h = jnp.dot(w1, f, preferred_element_type=jnp.float32) + zb
        h = jnp.maximum(h, 0.0)
        # middle 1x1 convs + ReLU (no_convs_fcomb - 2 == 2 of them)
        h = jnp.dot(w2, h.astype(jnp.bfloat16),
                    preferred_element_type=jnp.float32) + b2
        h = jnp.maximum(h, 0.0)
        h = jnp.dot(w3, h.astype(jnp.bfloat16),
                    preferred_element_type=jnp.float32) + b3
        h = jnp.maximum(h, 0.0)
        # last layer: 1x1 conv to num_classes, no activation
        o = jnp.dot(wl, h.astype(jnp.bfloat16),
                    preferred_element_type=jnp.float32) + bl
        out_ref[0, :, pl.ds(start, chunk)] = o.astype(out_ref.dtype)

    if n_chunks == 1:
        compute(0)
    else:
        def body(c, carry):
            compute(pl.multiple_of(c * chunk, chunk))
            return carry
        lax.fori_loop(0, n_chunks, body, 0, unroll=True)


def fcomb_forward(feature_map, z, params, *, tile_p=8192, chunk_p=2048):
    """feature_map: (B, F, H, W) NCHW; z: (B, L). Returns (B, num_classes, H, W)."""
    B, F, H, W = feature_map.shape
    NC = params["wl"].shape[0]
    HW = H * W

    # NCHW is native for the (channels-on-sublanes, pixels-on-lanes) layout;
    # only a free reshape here -- the bf16 cast happens inside the kernel.
    feat = feature_map.reshape(B, F, HW)

    # Fold the latent contribution of conv1 + bias into a per-batch channel
    # offset (tiny matmul in plain JAX, f32). Kills the repeated-z stream.
    zb = (z.astype(jnp.float32) @ params["w1z"].astype(jnp.float32).T
          + params["b1"].astype(jnp.float32)).reshape(B, F, 1)

    # ---- pixel-axis tiling -------------------------------------------------
    # Kernel is MXU-bound; bigger tiles buy nothing, so cap at 16384 lanes to
    # stay comfortable inside v7x's smaller VMEM as well.
    tile_p = min(int(tile_p), 16384)
    chunk_p = max(int(chunk_p), 128)
    if HW <= 128:
        tile_hw = HW                                   # full extent, one tile
    else:
        tile_hw = min((tile_p // 128) * 128, (HW // 128) * 128)
        # v7x megacore: guarantee >= 2 parallel grid steps so both TensorCores
        # get work (no effect on single-TC v5e/v6e).
        if B * -(-HW // tile_hw) < 2:
            half = -(-HW // 2)
            tile_hw = max(128, ((half + 127) // 128) * 128)
    n_tiles = pl.cdiv(HW, tile_hw)   # ragged tail masked by Pallas (per-pixel op)

    # ---- in-kernel chunking along the lane axis -----------------------------
    if tile_hw <= chunk_p:
        chunk = tile_hw
    else:
        chunk = max(128, (chunk_p // 128) * 128)
        while tile_hw % chunk:       # tile_hw is a multiple of 128 here
            chunk -= 128
    n_chunks = tile_hw // chunk

    w1 = params["w1f"].astype(jnp.bfloat16)
    w2 = params["w2"].astype(jnp.bfloat16)
    w3 = params["w3"].astype(jnp.bfloat16)
    wl = params["wl"].astype(jnp.bfloat16)
    b2 = params["b2"].astype(jnp.float32).reshape(F, 1)
    b3 = params["b3"].astype(jnp.float32).reshape(F, 1)
    bl = params["bl"].astype(jnp.float32).reshape(NC, 1)

    const = lambda shape: pl.BlockSpec(shape, lambda b, i: (0,) * len(shape))
    kernel = functools.partial(_fcomb_kernel, chunk=chunk, n_chunks=n_chunks)

    out = pl.pallas_call(
        kernel,
        out_shape=jax.ShapeDtypeStruct((B, NC, HW), feature_map.dtype),
        grid_spec=pltpu.PrefetchScalarGridSpec(
            num_scalar_prefetch=0,
            grid=(B, n_tiles),
            in_specs=[
                pl.BlockSpec((1, F, tile_hw), lambda b, i: (b, 0, i)),  # features
                pl.BlockSpec((1, F, 1), lambda b, i: (b, 0, 0)),        # folded z+b1
                const((F, F)),                    # W1 (feature part), (Cout, Cin)
                const((F, F)), const((F, 1)),     # W2, b2
                const((F, F)), const((F, 1)),     # W3, b3
                const((NC, F)), const((NC, 1)),   # W_last, b_last
            ],
            out_specs=pl.BlockSpec((1, NC, tile_hw), lambda b, i: (b, 0, i)),
        ),
        compiler_params=pltpu.CompilerParams(
            dimension_semantics=("parallel", "parallel"),
            vmem_limit_bytes=32 * 1024 * 1024),
    )(feat, zb, w1, w2, b2, w3, b3, wl, bl)

    return out.reshape(B, NC, H, W)


def fcomb_reference(feature_map, z, params):
    """Pure-JAX f32 reference with the original tile+concat+1x1-conv semantics."""
    B, F, H, W = feature_map.shape
    L = z.shape[1]
    zt = jnp.broadcast_to(z[:, :, None, None], (B, L, H, W))      # == torch tile
    x = jnp.concatenate([feature_map, zt], axis=1)                # (B, F+L, H, W)
    w1 = jnp.concatenate([params["w1f"], params["w1z"]], axis=1)  # (F, F+L)

    def conv1x1(w, b, t):
        return jnp.einsum("oc,bchw->bohw", w, t) + b[None, :, None, None]

    h = jnp.maximum(conv1x1(w1, params["b1"], x), 0.0)
    h = jnp.maximum(conv1x1(params["w2"], params["b2"], h), 0.0)
    h = jnp.maximum(conv1x1(params["w3"], params["b3"], h), 0.0)
    return conv1x1(params["wl"], params["bl"], h)


def init_params(key, num_filters0, latent_dim, num_classes):
    """Deterministic synthetic init, torch Conv2d-like (Cout, Cin) weights."""
    # TODO(synk): orthogonal/kaiming initializers from the torch module are not
    # replicated; forward semantics do not depend on them.
    ks = jax.random.split(key, 8)
    s = 0.2
    F, L, NC = num_filters0, latent_dim, num_classes
    return {
        # conv1 weight is (F, F+L, 1, 1) in torch; split into feat / latent parts.
        "w1f": jax.random.normal(ks[0], (F, F), jnp.float32) * s,
        "w1z": jax.random.normal(ks[1], (F, L), jnp.float32) * s,
        "b1": jax.random.normal(ks[2], (F,), jnp.float32) * 0.1,
        "w2": jax.random.normal(ks[3], (F, F), jnp.float32) * s,
        "b2": jax.random.normal(ks[4], (F,), jnp.float32) * 0.1,
        "w3": jax.random.normal(ks[5], (F, F), jnp.float32) * s,
        "b3": jax.random.normal(ks[6], (F,), jnp.float32) * 0.1,
        "wl": jax.random.normal(ks[7], (NC, F), jnp.float32) * s,
        "bl": jnp.zeros((NC,), jnp.float32),
    }


if __name__ == "__main__":
    # Config consistent with Fcomb(num_filters=[32,...], latent_dim=8,
    # num_output_channels=1, num_classes=4, no_convs_fcomb=4, use_tile=True).
    F, latent_dim, num_classes = 32, 8, 4
    key = jax.random.PRNGKey(0)
    k_feat, k_z, k_par, k_feat2, k_z2 = jax.random.split(key, 5)
    params = init_params(k_par, F, latent_dim, num_classes)

    # Check 1: small shapes (single-chunk path).
    B, H, W = 2, 16, 16
    feature_map = jax.random.normal(k_feat, (B, F, H, W), jnp.float32)
    z = jax.random.normal(k_z, (B, latent_dim), jnp.float32)
    out = jax.block_until_ready(fcomb_forward(feature_map, z, params))
    ref = fcomb_reference(feature_map, z, params)
    assert out.shape == (B, num_classes, H, W)
    # bf16 matmul inputs vs f32 reference -> loose-but-meaningful tolerance.
    assert jnp.allclose(out, ref, rtol=5e-2, atol=5e-2), float(
        jnp.max(jnp.abs(out - ref)))

    # Check 2: exercises the multi-tile grid (2 parallel steps for v7x) and the
    # unrolled in-kernel chunk loop (tile_hw=8192, chunk=2048, 4 chunks).
    B2, H2, W2 = 1, 128, 128
    feature_map2 = jax.random.normal(k_feat2, (B2, F, H2, W2), jnp.float32)
    z2 = jax.random.normal(k_z2, (B2, latent_dim), jnp.float32)
    out2 = jax.block_until_ready(fcomb_forward(feature_map2, z2, params))
    ref2 = fcomb_reference(feature_map2, z2, params)
    assert out2.shape == (B2, num_classes, H2, W2)
    assert jnp.allclose(out2, ref2, rtol=5e-2, atol=5e-2), float(
        jnp.max(jnp.abs(out2 - ref2)))

    print("KERNEL_OK")
</pallas_src>

<mosaic_0001>
module attributes {stable_mosaic.version = 11 : i64} {
  func.func @_fcomb_kernel(%arg0: i32, %arg1: i32, %arg2: memref<1x32x256xf32, #tpu.memory_space<vmem>>, %arg3: memref<1x32x1xf32, #tpu.memory_space<vmem>>, %arg4: memref<32x32xbf16, #tpu.memory_space<vmem>>, %arg5: memref<32x32xbf16, #tpu.memory_space<vmem>>, %arg6: memref<32x1xf32, #tpu.memory_space<vmem>>, %arg7: memref<32x32xbf16, #tpu.memory_space<vmem>>, %arg8: memref<32x1xf32, #tpu.memory_space<vmem>>, %arg9: memref<4x32xbf16, #tpu.memory_space<vmem>>, %arg10: memref<4x1xf32, #tpu.memory_space<vmem>>, %arg11: memref<1x4x256xf32, #tpu.memory_space<vmem>>) attributes {dimension_semantics = [#tpu.dimension_semantics<parallel>, #tpu.dimension_semantics<parallel>], iteration_bounds = array<i64: 2, 1>, scalar_prefetch = 0 : i64, scratch_operands = 0 : i64, tpu.core_type = #tpu.core_type<tc>, window_params = [{transform_indices = @transform_0, window_bounds = array<i64: 1, 32, 256>}, {transform_indices = @transform_1, window_bounds = array<i64: 1, 32, 1>}, {pipeline_mode = #tpu.pipeline_mode<synchronous>, transform_indices = @transform_2, window_bounds = array<i64: 32, 32>}, {pipeline_mode = #tpu.pipeline_mode<synchronous>, transform_indices = @transform_3, window_bounds = array<i64: 32, 32>}, {pipeline_mode = #tpu.pipeline_mode<synchronous>, transform_indices = @transform_4, window_bounds = array<i64: 32, 1>}, {pipeline_mode = #tpu.pipeline_mode<synchronous>, transform_indices = @transform_5, window_bounds = array<i64: 32, 32>}, {pipeline_mode = #tpu.pipeline_mode<synchronous>, transform_indices = @transform_6, window_bounds = array<i64: 32, 1>}, {pipeline_mode = #tpu.pipeline_mode<synchronous>, transform_indices = @transform_7, window_bounds = array<i64: 4, 32>}, {pipeline_mode = #tpu.pipeline_mode<synchronous>, transform_indices = @transform_8, window_bounds = array<i64: 4, 1>}, {transform_indices = @transform_9, window_bounds = array<i64: 1, 4, 256>}]} {
    %c0 = arith.constant 0 : index
    %c0_0 = arith.constant 0 : index
    %0 = vector.load %arg4[%c0, %c0_0] : memref<32x32xbf16, #tpu.memory_space<vmem>>, vector<32x32xbf16>
    %c0_1 = arith.constant 0 : index
    %c0_2 = arith.constant 0 : index
    %1 = vector.load %arg5[%c0_1, %c0_2] : memref<32x32xbf16, #tpu.memory_space<vmem>>, vector<32x32xbf16>
    %c0_3 = arith.constant 0 : index
    %c0_4 = arith.constant 0 : index
    %2 = vector.load %arg7[%c0_3, %c0_4] : memref<32x32xbf16, #tpu.memory_space<vmem>>, vector<32x32xbf16>
    %c0_5 = arith.constant 0 : index
    %c0_6 = arith.constant 0 : index
    %3 = vector.load %arg9[%c0_5, %c0_6] : memref<4x32xbf16, #tpu.memory_space<vmem>>, vector<4x32xbf16>
    %c0_7 = arith.constant 0 : index
    %c0_8 = arith.constant 0 : index
    %c0_9 = arith.constant 0 : index
    %4 = vector.load %arg3[%c0_7, %c0_8, %c0_9] : memref<1x32x1xf32, #tpu.memory_space<vmem>>, vector<1x32x1xf32>
    %5 = vector.shape_cast %4 : vector<1x32x1xf32> to vector<32x1xf32>
    %6 = vector.shape_cast %5 : vector<32x1xf32> to vector<32x1xf32>
    %7 = vector.broadcast %6 : vector<32x1xf32> to vector<32x256xf32>
    %c0_10 = arith.constant 0 : index
    %c0_11 = arith.constant 0 : index
    %8 = vector.load %arg6[%c0_10, %c0_11] : memref<32x1xf32, #tpu.memory_space<vmem>>, vector<32x1xf32>
    %9 = vector.shape_cast %8 : vector<32x1xf32> to vector<32x1xf32>
    %10 = vector.broadcast %9 : vector<32x1xf32> to vector<32x256xf32>
    %c0_12 = arith.constant 0 : index
    %c0_13 = arith.constant 0 : index
    %11 = vector.load %arg8[%c0_12, %c0_13] : memref<32x1xf32, #tpu.memory_space<vmem>>, vector<32x1xf32>
    %12 = vector.shape_cast %11 : vector<32x1xf32> to vector<32x1xf32>
    %13 = vector.broadcast %12 : vector<32x1xf32> to vector<32x256xf32>
    %c0_14 = arith.constant 0 : index
    %c0_15 = arith.constant 0 : index
    %14 = vector.load %arg10[%c0_14, %c0_15] : memref<4x1xf32, #tpu.memory_space<vmem>>, vector<4x1xf32>
    %15 = vector.shape_cast %14 : vector<4x1xf32> to vector<4x1xf32>
    %16 = vector.broadcast %15 : vector<4x1xf32> to vector<4x256xf32>
    %c0_16 = arith.constant 0 : index
    %c0_17 = arith.constant 0 : index
    %c0_18 = arith.constant 0 : index
    %17 = vector.load %arg2[%c0_16, %c0_17, %c0_18] : memref<1x32x256xf32, #tpu.memory_space<vmem>>, vector<1x32x256xf32>
    %18 = vector.shape_cast %17 : vector<1x32x256xf32> to vector<32x256xf32>
    %19 = arith.truncf %18 : vector<32x256xf32> to vector<32x256xbf16>
    %cst = arith.constant dense<0.000000e+00> : vector<32x256xf32>
    %20 = tpu.matmul %0, %19, %cst {dimension_numbers = #tpu.dot_dimension_numbers<[1], [0], [0], [1], [0, 0, 1, 1], [], []>} : vector<32x32xbf16>, vector<32x256xbf16>, vector<32x256xf32> -> vector<32x256xf32>
    %21 = arith.addf %20, %7 : vector<32x256xf32>
    %cst_19 = arith.constant 0.000000e+00 : f32
    %22 = vector.broadcast %cst_19 : f32 to vector<32x256xf32>
    %23 = arith.maximumf %21, %22 : vector<32x256xf32>
    %24 = arith.truncf %23 : vector<32x256xf32> to vector<32x256xbf16>
    %cst_20 = arith.constant dense<0.000000e+00> : vector<32x256xf32>
    %25 = tpu.matmul %1, %24, %cst_20 {dimension_numbers = #tpu.dot_dimension_numbers<[1], [0], [0], [1], [0, 0, 1, 1], [], []>} : vector<32x32xbf16>, vector<32x256xbf16>, vector<32x256xf32> -> vector<32x256xf32>
    %26 = arith.addf %25, %10 : vector<32x256xf32>
    %cst_21 = arith.constant 0.000000e+00 : f32
    %27 = vector.broadcast %cst_21 : f32 to vector<32x256xf32>
    %28 = arith.maximumf %26, %27 : vector<32x256xf32>
    %29 = arith.truncf %28 : vector<32x256xf32> to vector<32x256xbf16>
    %cst_22 = arith.constant dense<0.000000e+00> : vector<32x256xf32>
    %30 = tpu.matmul %2, %29, %cst_22 {dimension_numbers = #tpu.dot_dimension_numbers<[1], [0], [0], [1], [0, 0, 1, 1], [], []>} : vector<32x32xbf16>, vector<32x256xbf16>, vector<32x256xf32> -> vector<32x256xf32>
    %31 = arith.addf %30, %13 : vector<32x256xf32>
    %cst_23 = arith.constant 0.000000e+00 : f32
    %32 = vector.broadcast %cst_23 : f32 to vector<32x256xf32>
    %33 = arith.maximumf %31, %32 : vector<32x256xf32>
    %34 = arith.truncf %33 : vector<32x256xf32> to vector<32x256xbf16>
    %cst_24 = arith.constant dense<0.000000e+00> : vector<4x256xf32>
    %35 = tpu.matmul %3, %34, %cst_24 {dimension_numbers = #tpu.dot_dimension_numbers<[1], [0], [0], [1], [0, 0, 1, 1], [], []>} : vector<4x32xbf16>, vector<32x256xbf16>, vector<4x256xf32> -> vector<4x256xf32>
    %36 = arith.addf %35, %16 : vector<4x256xf32>
    %c0_25 = arith.constant 0 : index
    %c0_26 = arith.constant 0 : index
    %c0_27 = arith.constant 0 : index
    %37 = vector.load %arg11[%c0_25, %c0_26, %c0_27] : memref<1x4x256xf32, #tpu.memory_space<vmem>>, vector<1x4x256xf32>
    %38 = vector.shape_cast %37 : vector<1x4x256xf32> to vector<4x256xf32>
    %39 = vector.shape_cast %36 : vector<4x256xf32> to vector<1x4x256xf32>
    tpu.vector_store %arg11[%c0_25, %c0_26, %c0_27], %39 {strides = array<i32>} : memref<1x4x256xf32, #tpu.memory_space<vmem>>, vector<1x4x256xf32>,
    return
  }
  func.func @transform_0(%arg0: i32, %arg1: i32) -> (i32, i32, i32) {
    %c0_i32 = arith.constant 0 : i32
    %c0_i32_0 = arith.constant 0 : i32
    return %arg0, %c0_i32, %arg1 : i32, i32, i32
  }
  func.func @transform_1(%arg0: i32, %arg1: i32) -> (i32, i32, i32) {
    %c0_i32 = arith.constant 0 : i32
    %c0_i32_0 = arith.constant 0 : i32
    %c0_i32_1 = arith.constant 0 : i32
    return %arg0, %c0_i32, %c0_i32_0 : i32, i32, i32
  }
  func.func @transform_2(%arg0: i32, %arg1: i32) -> (i32, i32) {
    %c0_i32 = arith.constant 0 : i32
    %c0_i32_0 = arith.constant 0 : i32
    %c0_i32_1 = arith.constant 0 : i32
    return %c0_i32, %c0_i32_0 : i32, i32
  }
  func.func @transform_3(%arg0: i32, %arg1: i32) -> (i32, i32) {
    %c0_i32 = arith.constant 0 : i32
    %c0_i32_0 = arith.constant 0 : i32
    %c0_i32_1 = arith.constant 0 : i32
    return %c0_i32, %c0_i32_0 : i32, i32
  }
  func.func @transform_4(%arg0: i32, %arg1: i32) -> (i32, i32) {
    %c0_i32 = arith.constant 0 : i32
    %c0_i32_0 = arith.constant 0 : i32
    %c0_i32_1 = arith.constant 0 : i32
    return %c0_i32, %c0_i32_0 : i32, i32
  }
  func.func @transform_5(%arg0: i32, %arg1: i32) -> (i32, i32) {
    %c0_i32 = arith.constant 0 : i32
    %c0_i32_0 = arith.constant 0 : i32
    %c0_i32_1 = arith.constant 0 : i32
    return %c0_i32, %c0_i32_0 : i32, i32
  }
  func.func @transform_6(%arg0: i32, %arg1: i32) -> (i32, i32) {
    %c0_i32 = arith.constant 0 : i32
    %c0_i32_0 = arith.constant 0 : i32
    %c0_i32_1 = arith.constant 0 : i32
    return %c0_i32, %c0_i32_0 : i32, i32
  }
  func.func @transform_7(%arg0: i32, %arg1: i32) -> (i32, i32) {
    %c0_i32 = arith.constant 0 : i32
    %c0_i32_0 = arith.constant 0 : i32
    %c0_i32_1 = arith.constant 0 : i32
    return %c0_i32, %c0_i32_0 : i32, i32
  }
  func.func @transform_8(%arg0: i32, %arg1: i32) -> (i32, i32) {
    %c0_i32 = arith.constant 0 : i32
    %c0_i32_0 = arith.constant 0 : i32
    %c0_i32_1 = arith.constant 0 : i32
    return %c0_i32, %c0_i32_0 : i32, i32
  }
  func.func @transform_9(%arg0: i32, %arg1: i32) -> (i32, i32, i32) {
    %c0_i32 = arith.constant 0 : i32
    %c0_i32_0 = arith.constant 0 : i32
    return %arg0, %c0_i32, %arg1 : i32, i32, i32
  }
}

</mosaic_0001>

<bundles_post_ra>
// kernel: tpu_custom_call.1
= control target key start
LH: loop header
LB: loop body
LE: loop exit
PB: predicated region body
PF: predicated region fallthrough
CT: control target
= control target key end

     0   :  { %14 = vsyncpa [#allocation3], 0  ;;  %s1500_s0 = inlined_call_operand.vmem [shape: f32[2,32,256], index: 0, kind: input, shape index: {}]   ;;  %s1501_s1 = inlined_call_operand.vmem [shape: f32[2,32,1], index: 1, kind: input, shape index: {}]   ;;  %s1502_s2 = inlined_call_operand.vmem [shape: bf16[32,32], index: 2, kind: input, shape index: {}]   ;;  %s1503_s3 = inlined_call_operand.hbm [shape: bf16[32,32], index: 3, kind: input, shape index: {}]   ;;  %s1504_s4 = inlined_call_operand.vmem [shape: f32[32,1], index: 4, kind: input, shape index: {}]   ;;  %s1505_s5 = inlined_call_operand.hbm [shape: bf16[32,32], index: 5, kind: input, shape index: {}]   ;;  %s1506_s6 = inlined_call_operand.vmem [shape: f32[32,1], index: 6, kind: input, shape index: {}]   ;;  %s1507_s7 = inlined_call_operand.vmem [shape: bf16[4,32], index: 7, kind: input, shape index: {}]   ;;  %s1508_s8 = inlined_call_operand.vmem [shape: f32[4,1], index: 8, kind: input, shape index: {}]   ;;  %s1509_s9 = inlined_call_operand.hbm [shape: f32[2,4,256], index: 9, kind: output, shape index: {}]  }
   0x1   :  { %15 = vsyncpa [#allocation6], 0 }
   0x2   :  { %16 = vsyncpa [#allocation4], 0 }
   0x3   :  { %18 = vsyncpa [#allocation4 + $0x1], 0  ;;  %s1258_s30 = smov 0   ;;  %s1260_s10 = smov 0  }
   0x4   :  { %s1262_s11 = smov 0   ;;  %s1264_s12 = smov 0  }
   0x5   :  { %s1266_s13 = smov 0   ;;  %s1268_s14 = smov 0  }
   0x6 LB: > { %1518 = sst [smem:[#allocation11_spill]] %s1188_s11  ;;  %s936_s15 = sadd.s32 4294967295, %s1200_s14   ;;  %s1200_s14 = sphi %s1268_s14, %s24_s14   ;;  %s1196_s13 = sphi %s1266_s13, %s1539_s13   ;;  %s1192_s12 = sphi %s1264_s12, %s1535_s12   ;;  %s1188_s11 = sphi %s1262_s11, %s1534_s11   ;;  %s1184_s10 = sphi %s1260_s10, %s1538_s10   ;;  %s1180_s30 = sphi %s1258_s30, %s1537_s30  }
   0x7   : > { %1519 = sst [smem:[#allocation12_spill]] %s1196_s13  ;;  %s937_s16 = sadd.s32 4294967294, %s1200_s14  }
   0x8   : > { %s36_s17 = sadd.s32 1, %s1196_s13  ;;  %s246_s18 = sadd.s32 1, %s1188_s11 }
   0x9   : > { %p38_p0 = scmp.ge.s32.totalorder %s36_s17, 2  ;;  %p256_p1 = scmp.ne.s32.totalorder %s1188_s11, %s1184_s10 }
   0xa   : > { %p257_p2 = scmp.eq.s32.totalorder %s936_s15, 1  ;;  %p262_p3 = scmp.ne.s32.totalorder %s1184_s10, %s1180_s30 }
   0xb   : > { %s1541_s17 = smov (%p38_p0, %s36_s17), 0  ;;  %p263_p5 = scmp.eq.s32.totalorder %s937_s16, 1 }
   0xc   : > { %1520 = sst [smem:[#allocation13_spill]] %s1541_s17  ;;  %p1298_p4 = por %p257_p2, %p256_p1 }
   0xd   : > { %s241_s20 = ssub.s32 %s1196_s13, %s1541_s17  ;;  %p938_p6 = scmp.ge.s32.totalorder %s1200_s14, 1 }
   0xe   : > { %s1521_s19 = scalar_select %p1298_p4, 1, 0 }
   0xf   : > { %p244_p7 = scmp.eq.s32.totalorder %s241_s20, 0  ;;  %p1305_p8 = por %p263_p5, %p262_p3 }
  0x10   : > { %p270_p9 = scmp.lt.s32.totalorder %s1200_s14, 3  ;;  %p1317_p11 = scmp.eq.s32.totalorder %s936_s15, 0 }
  0x11   : > { %s1522_s21 = scalar_select %p1305_p8, 1, 0 }
  0x12   : > { %s1311_s22 = scalar_select %p244_p7, %s1188_s11, %s246_s18  }
  0x13   : > { %1523 = sst [smem:[#allocation14_spill]] %s1522_s21  ;;  %p1313_p10 = pnand %p938_p6, %p270_p9 }
  0x14   : > { %1524 = sst [smem:[#allocation15_spill]] %s1311_s22  ;;  %s1202_s25 = smov [#allocation2]  }
  0x15   : > { %s1525_s23 = scalar_select %p1313_p10, 1, 0 }
  0x16   : > { %s1526_s24 = scalar_select %p1317_p11, 1, 0 }
  0x17   : > { %p981_p12 = pneg %p1313_p10  ;;  %s285_s26 = sshll.u32 %s1202_s25, 4  ;;  %s286_s26 = int_to_ptr.vmem [resolvable:$true] %s285_s26 }
  0x18   : > { %s1203_s28 = smov [#allocation5]   ;;  %s1058_s18 = scalar_lea.hbm %s1503_s3, 256 }
  0x19   : > { %p1325_p13 = pnand %p1317_p11, %p981_p12  ;;  %s301_s29 = sshll.u32 %s1203_s28, 4  ;;  %s1329_s29 = int_to_ptr.vmem [resolvable:$true] %s301_s29 }
  0x1a   : > { %p1059_p0 = scmp.ne.s32.totalorder %s1503_s3, %s1058_s18  ;;  %p1065_p5 = scmp.lt.u32.totalorder %s1058_s18, %s1503_s3 }
  0x1b   : > { %p1060_p1 = pneg %p1325_p13 }
  0x1d   : > { %p1061_p2 = pnand %p1060_p1, %p1059_p0 }
  0x1f   : > { %p1062_p3 = pneg %p1061_p2 }
  0x21   : > { %p1067_p6 = pnand %p1065_p5, %p1062_p3 }
  0x23   : > { %1070 = shalt.err (!%p1067_p6)
}
  0x24   : > { %s1071_s28 = scalar_lea.vmem %s286_s26, 256  ;;  %p1079_p8 = scmp.lt.s32.totalorder %s286_s26, %s286_s26 }
  0x25   : > { %p1072_p7 = scmp.ne.s32.totalorder %s286_s26, %s1071_s28  ;;  %p1080_p4 = scmp.lt.s32.totalorder %s1071_s28, %s1071_s28 }
  0x27   : > { %p1074_p9 = pnand %p1072_p7, %p1060_p1  ;;  %p1081_p11 = por %p1080_p4, %p1079_p8 }
  0x29   : > { %p1075_p12 = pneg %p1074_p9 }
  0x2b   : > { %p1082_p10 = pnand %p1081_p11, %p1075_p12 }
  0x2d   : > { %1085 = shalt.err (!%p1082_p10)
}
  0x2e   : > { %s1204_s17 = smov 64   ;;  %s1205_s15 = smov 4  }
  0x2f   : > { %984 = dma.hbm_to_vmem [thread:$0]  (!%p1325_p13), %s1503_s3, 256, %s286_s26, [#allocation3], %s1204_s17, %s1204_s17, %s1205_s15  }
  0x30   : > { %s1086_s25 = scalar_lea.hbm %s1505_s5, 256 }
  0x31   : > { %p1087_p0 = scmp.ne.s32.totalorder %s1505_s5, %s1086_s25  ;;  %p1093_p10 = scmp.lt.u32.totalorder %s1086_s25, %s1505_s5 }
  0x33   : > { %p1089_p4 = pnand %p1087_p0, %p1060_p1 }
  0x35   : > { %p1090_p8 = pneg %p1089_p4 }
  0x37   : > { %p1095_p11 = pnand %p1093_p10, %p1090_p8 }
  0x39   : > { %1098 = shalt.err (!%p1095_p11)
}
  0x3a   : > { %s1099_s26 = scalar_lea.vmem %s1329_s29, 256  ;;  %p1107_p6 = scmp.lt.s32.totalorder %s1329_s29, %s1329_s29 }
  0x3b   : > { %p1100_p2 = scmp.ne.s32.totalorder %s1329_s29, %s1099_s26  ;;  %p1108_p7 = scmp.lt.s32.totalorder %s1099_s26, %s1099_s26 }
  0x3d   : > { %p1102_p3 = pnand %p1100_p2, %p1060_p1  ;;  %p1109_p9 = por %p1108_p7, %p1107_p6 }
  0x3f   : > { %p1103_p5 = pneg %p1102_p3 }
  0x41   : > { %p1110_p12 = pnand %p1109_p9, %p1103_p5 }
  0x43   : > { %1113 = shalt.err (!%p1110_p12)
}
  0x44   : > { %987 = dma.hbm_to_vmem [thread:$0]  (!%p1325_p13), %s1505_s5, 256, %s1329_s29, [#allocation6], %s1204_s17, %s1204_s17, %s1205_s15  }
  0x45   : > { %p1528_p0 = scmp.ne.s32.totalorder %s1525_s23, 0 }
  0x46   : > { %p1529_p4 = scmp.ne.s32.totalorder (!%p1528_p0), %s1526_s24, 0 }
  0x47   : > { %347 = sbr.rel (%p1528_p0) target bundleno = 1028 (0x404), region = 56 }
  0x4e   : > { %1167 = dma.done.wait (%p1529_p4), [#allocation3], 256  }
  0x4f   : > { %1169 = vsyncadd (%p1529_p4), [#allocation3], 4294967040 }
  0x50   : > { %1171 = dma.done.wait (%p1529_p4), [#allocation6], 256  }
  0x51   : > { %1173 = vsyncadd (%p1529_p4), [#allocation6], 4294967040  ;;  %p397_p1 = scmp.lt.s32.totalorder %s1192_s12, 1  ;;  %v1206_v0 = vmov 0   ;;  %v1052_v16 = vld [vmem:[%s1502_s2] sm:$0xff]   ;;  %vm526_vm0 = vcmask 261120  }
  0x52   : > { %565 = vmatprep.mubr.bf16.mxu0 %v1206_v0  ;;  %1050 = vset.pattern.permute.xlu0 %v1206_v0  ;;  %v450_v18 = vld [vmem:[%s1504_s4] sm:$0xff]  ;;  %v451_v19 = vld [vmem:[%s1504_s4 + $0x8] sm:$0xff]  ;;  %v452_v20 = vld [vmem:[%s1504_s4 + $0x10] sm:$0xff]  ;;  %s970_s29 = sshll.u32 %s1192_s12, 7  ;;  %p1530_p8 = scmp.ne.s32.totalorder %s1521_s19, 0 }
  0x53   : > { %s398_s22 = scalar_select %p397_p1, %s1192_s12, 1  ;;  %1051 = vset.pattern.permute.xlu1 %v1206_v0  ;;  %646 = vmatprep.mubr.bf16.mxu1 %v1206_v0  ;;  %v1053_v21 = vld [vmem:[%s1502_s2 + $0x8] sm:$0xff]   ;;  %v453_v22 = vld [vmem:[%s1504_s4 + $0x18] sm:$0xff]  ;;  %v474_v23 = vld [vmem:[%s1506_s6] sm:$0xff] }
  0x54   : > { %v475_v24 = vld [vmem:[%s1506_s6 + $0x8] sm:$0xff]  ;;  %v476_v25 = vld [vmem:[%s1506_s6 + $0x10] sm:$0xff]  ;;  %v477_v26 = vld [vmem:[%s1506_s6 + $0x18] sm:$0xff]  ;;  %s1207_s12 = smov [#allocation7]  }
  0x55   : > { %s968_s23 = sshll.u32 %s398_s22, 6  ;;  %s969_s24 = sshll.u32 %s398_s22, 5  ;;  %v498_v27 = vld [vmem:[%s1508_s8] sm:$0xf]  ;;  %v1055_v61 = vld [vmem:[#allocation2 + $0x8] sm:$0xff]  }
  0x56   : > { %s404_s17 = scalar_lea.vmem %s1500_s0, %s968_s23  ;;  %s410_s16 = scalar_lea.vmem %s1501_s1, %s969_s24  ;;  %v1054_v60 = vld [vmem:[#allocation2] sm:$0xff]  }
  0x57   : > { %v505_v1 = vld [vmem:[%s404_s17 + $0x8] sm:$0xff]  ;;  %v507_v2 = vld [vmem:[%s404_s17 + $0x18] sm:$0xff]  ;;  %v504_v3 = vld [vmem:[%s404_s17] sm:$0xff]  ;;  %s393_s23 = sand.u32 1, %s1184_s10   ;;  %s1118_s25 = sshll.u32 %s1207_s12, 4  ;;  %s1119_s25 = int_to_ptr.vmem [resolvable:$false] %s1118_s25 }
  0x58   : > { %v513_v4 = vpack.c.bf16 %v507_v2, %v505_v1  ;;  %v506_v5 = vld [vmem:[%s404_s17 + $0x10] sm:$0xff]  ;;  %v509_v6 = vld [vmem:[%s404_s17 + $0x28] sm:$0xff]  ;;  %v511_v7 = vld [vmem:[%s404_s17 + $0x38] sm:$0xff]  ;;  %s945_s27 = sshll.u32 %s393_s23, 3  ;;  %s810_s18 = scalar_lea.sflag [#allocation4], %s393_s23 }
  0x59   : > { %v512_v8 = vpack.c.bf16 %v506_v5, %v504_v3  ;;  %v515_v9 = vpack.c.bf16 %v511_v7, %v509_v6  ;;  %v508_v10 = vld [vmem:[%s404_s17 + $0x20] sm:$0xff]  ;;  %v510_v11 = vld [vmem:[%s404_s17 + $0x30] sm:$0xff]  ;;  %v427_v15 = vld [vmem:[%s410_s16 + $0x8] sm:$0xff]  ;;  %s395_s17 = scalar_lea.vmem [#allocation7], %s945_s27  ;;  %s1120_s28 = scalar_lea.vmem %s1119_s25, 256 }
  0x5a   : > { %533 = vmatprep.subr.bf16.mxu0 %v513_v4  ;;  %v514_v12 = vpack.c.bf16 %v510_v11, %v508_v10  ;;  %v426_v13 = vld [vmem:[%s410_s16] sm:$0xff]  ;;  %v428_v14 = vld [vmem:[%s410_s16 + $0x10] sm:$0xff]  ;;  %v429_v17 = vld [vmem:[%s410_s16 + $0x18] sm:$0xff]  ;;  %s826_s24 = sshll.u32 %s395_s17, 4  ;;  %s1453_s16 = scalar_lea.hbm %s1509_s9, %s970_s29  ;;  %s1455_s24 = int_to_ptr.vmem [resolvable:$true] %s826_s24 }
  0x5b   : > { %534 = vmatpush1.bf16.msra.mxu0 %v512_v8  ;;  %432 = vperm.xlu0 %1050, %v426_v13   ;;  %s1114_s20 = scalar_lea.vmem %s1455_s24, 128  ;;  %p1121_p2 = scmp.lt.s32.totalorder %s1455_s24, %s1119_s25 }
  0x5c   : > { %535 = vmatprep.subr.bf16.mxu0 %v515_v9  ;;  %442 = vperm.xlu1 %1051, %v428_v14   ;;  %p1115_p13 = scmp.ne.s32.totalorder %s1455_s24, %s1114_s20  ;;  %p1122_p3 = scmp.lt.s32.totalorder %s1120_s28, %s1114_s20 }
  0x5e   : > { %p1116_p10 = pnand %p1115_p13, %p1530_p8  ;;  %p1123_p5 = por %p1122_p3, %p1121_p2 }
  0x5f   : > { %536 = vmatpush1.bf16.msra.mxu0 %v514_v12  ;;  %437 = vperm.xlu0 %1050, %v427_v15  }
  0x60   : > { %447 = vperm.xlu1 %1051, %v429_v17   ;;  %p1117_p11 = pneg %p1116_p10 }
  0x62   : > { %952 = vmatmul.mubr.msk.bf16.vlgmr.msra.gmra.mrb[0].mxu0 %vm526_vm0, %v1052_v16  ;;  %p1124_p6 = pnand %p1123_p5, %p1117_p11 }
  0x63   : > { %575 = vmatprep.mubr.bf16.mxu0 %v1206_v0  ;;  %456 = vperm.xlu0 %1050, %v450_v18  }
  0x64   : > { %461 = vperm.xlu1 %1051, %v451_v19  }
  0x67   : > { %466 = vperm.xlu0 %1050, %v452_v20  }
  0x68   : > { %471 = vperm.xlu1 %1051, %v453_v22  }
  0x6a   : > { %953 = vmatmul.mubr.msk.bf16.gmra.mrb[4].mxu0 %vm526_vm0, %v1053_v21 }
  0x6b   : > { %727 = vmatprep.mubr.bf16.mxu0 %v1206_v0  ;;  %480 = vperm.xlu0 %1050, %v474_v23  }
  0x6c   : > { %485 = vperm.xlu1 %1051, %v475_v24  }
  0x6f   : > { %490 = vperm.xlu0 %1050, %v476_v25  }
  0x70   : > { %495 = vperm.xlu1 %1051, %v477_v26  }
  0x73   : > { %501 = vperm.xlu0 %1050, %v498_v27  }
  0xda   : > { %v433_v28 = vpop.permute.xlu0 %432 }
  0xdb   : > { %v443_v37 = vpop.permute.xlu1 %442 }
  0xde   : > { %v438_v32 = vpop.permute.xlu0 %437 }
  0xdf   : > { %v448_v48 = vpop.permute.xlu1 %447 }
  0xe2   : > { %v457_v62 = vpop.permute.xlu0 %456 }
  0xe3   : > { %v462_v3 = vpop.permute.xlu1 %461 }
  0xe6   : > { %v467_v14 = vpop.permute.xlu0 %466 }
  0xe7   : > { %v472_v19 = vpop.permute.xlu1 %471 }
 0x135   : > { %v567_v29 = vpop.f32.mrb[0].mxu0 }
 0x136   : > { %v568_v30 = vadd.f32 %v567_v29, %v433_v28  ;;  %v569_v31 = vpop.f32.mrb[1].mxu0 }
 0x137   : > { %v570_v33 = vadd.f32 %v569_v31, %v433_v28  ;;  %v571_v34 = vpop.f32.mrb[2].mxu0  ;;  %v1056_v31 = vld [vmem:[#allocation5] sm:$0xff]  }
 0x138   : > { %v572_v35 = vadd.f32 %v571_v34, %v438_v32  ;;  %v573_v36 = vpop.f32.mrb[3].mxu0  ;;  %v586_v39 = vmax.f32 %v568_v30, 0.0 }
 0x139   : > { %v574_v38 = vadd.f32 %v573_v36, %v438_v32  ;;  %v587_v41 = vmax.f32 %v570_v33, 0.0  ;;  %v1057_v32 = vld [vmem:[#allocation5 + $0x8] sm:$0xff]   ;;  %v481_v33 = vpop.permute.xlu0 %480 }
 0x13a   : > { %v588_v40 = vmax.f32 %v572_v35, 0.0 }
 0x13b   : > { %v589_v42 = vmax.f32 %v574_v38, 0.0 }
 0x13c   : > { %v594_v43 = vpack.c.bf16 %v588_v40, %v586_v39 }
 0x13d   : > { %v577_v44 = vpop.f32.mrb[4].mxu0  ;;  %v595_v45 = vpack.c.bf16 %v589_v42, %v587_v41 }
 0x13e   : > { %v578_v46 = vadd.f32 %v577_v44, %v443_v37  ;;  %v579_v47 = vpop.f32.mrb[5].mxu0 }
 0x13f   : > { %v580_v49 = vadd.f32 %v579_v47, %v443_v37  ;;  %v581_v50 = vpop.f32.mrb[6].mxu0  ;;  %614 = vmatprep.subr.bf16.mxu1 %v595_v45  ;;  %v486_v37 = vpop.permute.xlu1 %485 }
 0x140   : > { %v582_v51 = vadd.f32 %v581_v50, %v448_v48  ;;  %v583_v52 = vpop.f32.mrb[7].mxu0  ;;  %615 = vmatpush1.bf16.msra.mxu1 %v594_v43  ;;  %v590_v54 = vmax.f32 %v578_v46, 0.0 }
 0x141   : > { %v584_v53 = vadd.f32 %v583_v52, %v448_v48  ;;  %v591_v56 = vmax.f32 %v580_v49, 0.0  ;;  %v491_v48 = vpop.permute.xlu0 %490 }
 0x142   : > { %v592_v55 = vmax.f32 %v582_v51, 0.0 }
 0x143   : > { %v593_v57 = vmax.f32 %v584_v53, 0.0  ;;  %v496_v52 = vpop.permute.xlu1 %495 }
 0x144   : > { %v596_v58 = vpack.c.bf16 %v592_v55, %v590_v54 }
 0x145   : > { %v597_v59 = vpack.c.bf16 %v593_v57, %v591_v56 }
 0x147   : > { %616 = vmatprep.subr.bf16.mxu1 %v597_v59 }
 0x148   : > { %617 = vmatpush1.bf16.msra.mxu1 %v596_v58 }
 0x14b   : > { %956 = vmatmul.mubr.msk.bf16.vlgmr.msra.gmra.mrb[0].mxu1 %vm526_vm0, %v1054_v60 }
 0x14c   : > { %656 = vmatprep.mubr.bf16.mxu1 %v1206_v0 }
 0x153   : > { %957 = vmatmul.mubr.msk.bf16.gmra.mrb[4].mxu1 %vm526_vm0, %v1055_v61 }
 0x154   : > { %795 = vmatprep.mubr.bf16.mxu1 %v1206_v0 }
 0x21e   : > { %v648_v63 = vpop.f32.mrb[0].mxu1 }
 0x21f   : > { %v649_v1 = vadd.f32 %v648_v63, %v457_v62  ;;  %v650_v2 = vpop.f32.mrb[1].mxu1 }
 0x220   : > { %v651_v4 = vadd.f32 %v650_v2, %v457_v62  ;;  %v652_v5 = vpop.f32.mrb[2].mxu1  ;;  %v502_v2 = vpop.permute.xlu0 %501 }
 0x221   : > { %v653_v6 = vadd.f32 %v652_v5, %v462_v3  ;;  %v654_v7 = vpop.f32.mrb[3].mxu1  ;;  %v667_v9 = vmax.f32 %v649_v1, 0.0  ;;  %v425_v1 = vld [vmem:[%s1507_s7] sm:$0x3] }
 0x222   : > { %v655_v8 = vadd.f32 %v654_v7, %v462_v3  ;;  %v668_v11 = vmax.f32 %v651_v4, 0.0 }
 0x223   : > { %v669_v10 = vmax.f32 %v653_v6, 0.0 }
 0x224   : > { %v670_v12 = vmax.f32 %v655_v8, 0.0 }
 0x225   : > { %v675_v13 = vpack.c.bf16 %v669_v10, %v667_v9 }
 0x226   : > { %v676_v15 = vpack.c.bf16 %v670_v12, %v668_v11  ;;  %v658_v16 = vpop.f32.mrb[4].mxu1 }
 0x227   : > { %v659_v17 = vadd.f32 %v658_v16, %v467_v14  ;;  %v660_v18 = vpop.f32.mrb[5].mxu1 }
 0x228   : > { %v661_v20 = vadd.f32 %v660_v18, %v467_v14  ;;  %v662_v21 = vpop.f32.mrb[6].mxu1  ;;  %695 = vmatprep.subr.bf16.mxu0 %v676_v15 }
 0x229   : > { %v663_v22 = vadd.f32 %v662_v21, %v472_v19  ;;  %v664_v23 = vpop.f32.mrb[7].mxu1  ;;  %696 = vmatpush1.bf16.msra.mxu0 %v675_v13  ;;  %v671_v25 = vmax.f32 %v659_v17, 0.0 }
 0x22a   : > { %v665_v24 = vadd.f32 %v664_v23, %v472_v19  ;;  %v672_v27 = vmax.f32 %v661_v20, 0.0 }
 0x22b   : > { %v673_v26 = vmax.f32 %v663_v22, 0.0 }
 0x22c   : > { %v674_v28 = vmax.f32 %v665_v24, 0.0 }
 0x22d   : > { %v677_v29 = vpack.c.bf16 %v673_v26, %v671_v25 }
 0x22e   : > { %v678_v30 = vpack.c.bf16 %v674_v28, %v672_v27 }
 0x230   : > { %697 = vmatprep.subr.bf16.mxu0 %v678_v30 }
 0x231   : > { %698 = vmatpush1.bf16.msra.mxu0 %v677_v29 }
 0x234   : > { %960 = vmatmul.mubr.msk.bf16.vlgmr.msra.gmra.mrb[8].mxu0 %vm526_vm0, %v1056_v31 }
 0x235   : > { %737 = vmatprep.mubr.bf16.mxu0 %v1206_v0 }
 0x23c   : > { %961 = vmatmul.mubr.msk.bf16.gmra.mrb[12].mxu0 %vm526_vm0, %v1057_v32 }
 0x307   : > { %v729_v34 = vpop.f32.mrb[8].mxu0 }
 0x308   : > { %v730_v35 = vadd.f32 %v729_v34, %v481_v33  ;;  %v731_v36 = vpop.f32.mrb[9].mxu0 }
 0x309   : > { %v732_v38 = vadd.f32 %v731_v36, %v481_v33  ;;  %v733_v39 = vpop.f32.mrb[10].mxu0 }
 0x30a   : > { %v734_v40 = vadd.f32 %v733_v39, %v486_v37  ;;  %v735_v41 = vpop.f32.mrb[11].mxu0  ;;  %v748_v43 = vmax.f32 %v730_v35, 0.0 }
 0x30b   : > { %v736_v42 = vadd.f32 %v735_v41, %v486_v37  ;;  %v749_v45 = vmax.f32 %v732_v38, 0.0 }
 0x30c   : > { %v750_v44 = vmax.f32 %v734_v40, 0.0 }
 0x30d   : > { %v751_v46 = vmax.f32 %v736_v42, 0.0 }
 0x30e   : > { %v756_v47 = vpack.c.bf16 %v750_v44, %v748_v43 }
 0x30f   : > { %v757_v0 = vpack.c.bf16 %v751_v46, %v749_v45  ;;  %v739_v49 = vpop.f32.mrb[12].mxu0 }
 0x310   : > { %v740_v50 = vadd.f32 %v739_v49, %v491_v48  ;;  %v741_v51 = vpop.f32.mrb[13].mxu0 }
 0x311   : > { %v742_v53 = vadd.f32 %v741_v51, %v491_v48  ;;  %v743_v54 = vpop.f32.mrb[14].mxu0  ;;  %763 = vmatprep.subr.bf16.mxu1 %v757_v0 }
 0x312   : > { %v744_v55 = vadd.f32 %v743_v54, %v496_v52  ;;  %v745_v56 = vpop.f32.mrb[15].mxu0  ;;  %764 = vmatpush1.bf16.msra.mxu1 %v756_v47  ;;  %v752_v58 = vmax.f32 %v740_v50, 0.0 }
 0x313   : > { %v746_v57 = vadd.f32 %v745_v56, %v496_v52  ;;  %v753_v60 = vmax.f32 %v742_v53, 0.0 }
 0x314   : > { %v754_v59 = vmax.f32 %v744_v55, 0.0 }
 0x315   : > { %v755_v61 = vmax.f32 %v746_v57, 0.0 }
 0x316   : > { %v758_v62 = vpack.c.bf16 %v754_v59, %v752_v58 }
 0x317   : > { %v759_v63 = vpack.c.bf16 %v755_v61, %v753_v60 }
 0x319   : > { %765 = vmatprep.subr.bf16.mxu1 %v759_v63 }
 0x31a   : > { %766 = vmatpush1.bf16.msra.mxu1 %v758_v62 }
 0x31d   : > { %962 = vmatmul.mubr.msk.bf16.vlgmr.msra.gmra.mrb[8].mxu1 %vm526_vm0, %v425_v1 }
 0x3f0   : > { %v797_v3 = vpop.f32.mrb[8].mxu1 }
 0x3f1   : > { %v798_v4 = vadd.f32 %v797_v3, %v502_v2  ;;  %v799_v5 = vpop.f32.mrb[9].mxu1 }
 0x3f2   : > { %v800_v6 = vadd.f32 %v799_v5, %v502_v2  ;;  %v801_v7 = vpop.f32.mrb[10].mxu1 }
 0x3f3   : > { %v802_v8 = vpop.f32.mrb[11].mxu1 }
 0x3f4   : > { %v806_v9 = vcombine.low %v798_v4, %v800_v6 }
 0x3f6   : > { %808 = vst [vmem:[%s395_s17] sm:$0xff] %v806_v9 }
 0x3f7   : > { %1127 = shalt.err (!%p1124_p6)
}
 0x3f8   : > { %s1128_s26 = scalar_lea.hbm %s1453_s16, 128  ;;  %s1132_s22 = scalar_lea.hbm %s1509_s9, 256 }
 0x3f9   : > { %p1129_p7 = scmp.ne.s32.totalorder %s1453_s16, %s1128_s26  ;;  %p1133_p0 = scmp.lt.u32.totalorder %s1453_s16, %s1509_s9 }
 0x3fa   : > { %p1134_p4 = scmp.lt.u32.totalorder %s1132_s22, %s1128_s26  ;;  %p1136_p13 = scmp.lt.u32.totalorder %s1128_s26, %s1453_s16 }
 0x3fb   : > { %p1130_p9 = pnand %p1129_p7, %p1530_p8 }
 0x3fc   : > { %p1135_p1 = por %p1134_p4, %p1133_p0 }
 0x3fd   : > { %p1131_p12 = pneg %p1130_p9 }
 0x3fe   : > { %p1137_p10 = por %p1136_p13, %p1135_p1 }
 0x400   : > { %p1138_p11 = pnand %p1137_p10, %p1131_p12 }
 0x402   : > { %1141 = shalt.err (!%p1138_p11)
}
 0x403   : > { %979 = dma.vmem_to_hbm [thread:$0]  (%p1530_p8), %s1455_s24, 128, %s1453_s16, %s810_s18  }
 0x404 PF: > { %s1531_s29 = sld [smem:[#allocation14_spill]]  ;;  %p996_p2 = scmp.ge.s32.totalorder %s1200_s14, 2 }
 0x405   : > { %s838_s17 = sand.u32 1, %s1180_s30  }
 0x406   : > { %s839_s15 = scalar_lea.sflag [#allocation4], %s838_s17 }
 0x40a   : > { %p1532_p3 = scmp.ne.s32.totalorder %s1531_s29, 0 }
 0x40c   : > { %p989_p5 = pnand %p996_p2, %p1532_p3 }
 0x40e   : > { %1175 = dma.done.wait (!%p989_p5), %s839_s15, 128  }
 0x40f   : > { %1177 = vsyncadd (!%p989_p5), %s839_s15, 4294967168  ;;  %s24_s14 = sadd.s32 1, %s1200_s14   ;;  %s1533_s13 = sld [smem:[#allocation11_spill]] }
 0x410   : > { %p21_p6 = scmp.ge.s32.totalorder %s24_s14, 4   ;;  %s1534_s11 = sld [smem:[#allocation15_spill]] }
 0x411   : > { %s1535_s12 = sld [smem:[#allocation12_spill]]  ;;  %s1536_s19 = sld [smem:[#allocation13_spill]] }
 0x412   : > { %s1537_s30 = smov %s1184_s10  ;;  %23 = sbr.rel (!%p21_p6) target bundleno = 6 (0x6), region = 103 }
 0x415   : > { %s1538_s10 = smov %s1533_s13 }
 0x417   : > { %s1539_s13 = smov %s1536_s19 }
 0x419   :  { %844 = vsyncpa [#allocation3], 1 }
 0x41a   :  { %846 = vsyncpa [#allocation3 + $0x1], 1 }
 0x41b   :  { %847 = vsyncpa [#allocation6], 1 }
 0x41c   :  { %848 = vsyncpa [#allocation4], 1 }
 0x41d   :  { %850 = vsyncpa [#allocation4 + $0x1], 1 }

</bundles_post_ra>
